<compile_context>
chip_gen: v6e
topology: v6e:2x2x1
jax: 0.10.0
libtpu: 0.0.40
codegen_flags: <defaults>
</compile_context>

<pallas_src>
import jax
import jax.numpy as jnp
from jax.experimental import pallas as pl
from jax.experimental.pallas import tpu as pltpu

_LANE = 128
_LANE_CANDIDATES = (8192, 4096, 2048, 1024, 512, 256, 128)


def _copy_kernel(x_ref, o_ref):
    # Pure passthrough of the current tile.
    o_ref[...] = x_ref[...]


def _sublane_multiple(itemsize: int) -> int:
    """Sublane packing multiple: 8 for 32-bit, 16 for 16-bit, 32 for 8-bit."""
    return max(8, 32 // max(1, itemsize))


def _block_target_bytes() -> int:
    """Per-block byte target: ~2 MiB on v5e, ~4 MiB on v6e/v7x."""
    try:
        kind = jax.devices()[0].device_kind.lower()
    except Exception:
        kind = ""
    if "v5e" in kind or "v5 lite" in kind or "v5lite" in kind:
        return 2 * 1024 * 1024
    return 4 * 1024 * 1024


def _lane_dense_2d(n_padded: int):
    """Pick (rows, lane_width) with lane_width a multiple of 128 (wide first)."""
    for lane in _LANE_CANDIDATES:
        if n_padded % lane == 0:
            return n_padded // lane, lane
    # Unreachable: callers pad n_padded to a multiple of 128.
    return n_padded // _LANE, _LANE


def _choose_block_rows(rows: int, row_bytes: int, sublane_mult: int,
                       target_bytes: int) -> int:
    """Size blocks by bytes; force >=2 (even-preferred) blocks for big inputs."""
    total_bytes = rows * row_bytes
    # Small inputs (<~1 MiB) or too few rows to split: one full-array block.
    if total_bytes <= (1 << 20) or rows <= sublane_mult:
        return rows
    # At least 2 blocks so the input DMA of block i+1 overlaps the output DMA
    # of block i; prefer an even block count so both v7x TCs split the grid.
    n_blocks = max(2, pl.cdiv(total_bytes, target_bytes))
    if n_blocks % 2:
        n_blocks += 1
    br = pl.cdiv(rows, n_blocks)
    br = max(sublane_mult, (br // sublane_mult) * sublane_mult)
    return min(br, rows)


def _pallas_copy(x: jax.Array, *, donate: bool = False) -> jax.Array:
    """Lane-dense, byte-tiled Pallas copy of x (identity via explicit kernel)."""
    orig_shape = x.shape
    dtype = x.dtype
    n = x.size
    if n == 0:
        return x

    itemsize = jnp.dtype(dtype).itemsize
    flat = x.reshape(-1)

    # Pad to a multiple of 128 so the copy is always lane-dense (unmasked
    # stores) and always tileable/pipelined regardless of the element count.
    pad = (-n) % _LANE
    if pad:
        flat = jnp.pad(flat, (0, pad))
    n_padded = n + pad

    rows, lane = _lane_dense_2d(n_padded)
    x2 = flat.reshape(rows, lane)

    row_bytes = lane * itemsize
    sublane_mult = _sublane_multiple(itemsize)
    block_r = _choose_block_rows(rows, row_bytes, sublane_mult,
                                 _block_target_bytes())
    grid_r = pl.cdiv(rows, block_r)

    out2 = pl.pallas_call(
        _copy_kernel,
        out_shape=jax.ShapeDtypeStruct((rows, lane), dtype),
        grid_spec=pltpu.PrefetchScalarGridSpec(
            num_scalar_prefetch=0,
            grid=(grid_r,),
            in_specs=[pl.BlockSpec((block_r, lane), lambda i: (i, 0))],
            out_specs=pl.BlockSpec((block_r, lane), lambda i: (i, 0)),
        ),
        compiler_params=pltpu.CompilerParams(
            dimension_semantics=("parallel",),
            # 2 in + 2 out double-buffers of <=4 MiB blocks (<=16 MiB) fit with
            # headroom on every generation (v7x physical VMEM is 64 MiB).
            vmem_limit_bytes=32 * 1024 * 1024,
        ),
        cost_estimate=pl.CostEstimate(
            flops=0,
            transcendentals=0,
            bytes_accessed=2 * n_padded * itemsize,
        ),
        input_output_aliases=({0: 0} if donate else {}),
    )(x2)

    out_flat = out2.reshape(-1)
    if pad:
        out_flat = out_flat[:n]
    return out_flat.reshape(orig_shape)


def empty_module_forward(x: jax.Array, *, force_copy: bool = False,
                         donate: bool = False) -> jax.Array:
    """Pallas implementation of EmptyModule.forward: returns x unchanged.

    Default path is a true identity (no kernel launch, zero HBM traffic) —
    the highest-value optimization for this module. Set force_copy=True to
    route through the tiled Pallas copy kernel; donate=True additionally
    aliases the kernel input/output buffer (useful only when the caller
    donates x at a jit boundary).
    """
    if not force_copy:
        return x
    return _pallas_copy(x, donate=donate)


if __name__ == "__main__":
    key = jax.random.PRNGKey(0)
    k1, k2, k3, k4 = jax.random.split(key, 4)

    # Module-consistent small NCHW input: batch=2, channels=4, spatial=16x16.
    x = jax.random.normal(k1, (2, 4, 16, 16), dtype=jnp.float32)

    # Fast path: identity with zero HBM traffic (the recommended path).
    y = empty_module_forward(x)
    jax.block_until_ready(y)
    assert y.shape == x.shape and y.dtype == x.dtype
    assert bool(jnp.all(y == x))

    # Pallas copy path on the small input (single full-array block).
    y_copy = empty_module_forward(x, force_copy=True)
    jax.block_until_ready(y_copy)
    assert y_copy.shape == x.shape and y_copy.dtype == x.dtype
    assert bool(jnp.all(y_copy == x))

    # Larger f32 input (2 MiB) — validates the tiled / pipelined path (grid>=2).
    x_big = jax.random.normal(k2, (2, 4, 256, 256), dtype=jnp.float32)
    y_big = empty_module_forward(x_big, force_copy=True)
    jax.block_until_ready(y_big)
    assert y_big.shape == x_big.shape and y_big.dtype == x_big.dtype
    assert bool(jnp.all(y_big == x_big))

    # bf16 input — exercises the dtype-aware sublane alignment (16 for 16-bit).
    x_bf16 = jax.random.normal(k3, (2, 8, 256, 256),
                               dtype=jnp.float32).astype(jnp.bfloat16)
    y_bf16 = empty_module_forward(x_bf16, force_copy=True)
    jax.block_until_ready(y_bf16)
    assert y_bf16.shape == x_bf16.shape and y_bf16.dtype == jnp.bfloat16
    assert bool(jnp.all(y_bf16 == x_bf16))

    # Non-128-divisible element count — exercises the pad-and-slice fallback.
    x_odd = jax.random.normal(k4, (3, 5, 7, 11), dtype=jnp.float32)
    y_odd = empty_module_forward(x_odd, force_copy=True)
    jax.block_until_ready(y_odd)
    assert y_odd.shape == x_odd.shape and y_odd.dtype == x_odd.dtype
    assert bool(jnp.all(y_odd == x_odd))

    print("KERNEL_OK")
</pallas_src>

<mosaic_0001>
module attributes {stable_mosaic.version = 11 : i64} {
  func.func @_copy_kernel(%arg0: i32, %arg1: memref<1x2048xf32, #tpu.memory_space<vmem>>, %arg2: memref<1x2048xf32, #tpu.memory_space<vmem>>) attributes {dimension_semantics = [#tpu.dimension_semantics<parallel>], iteration_bounds = array<i64: 1>, scalar_prefetch = 0 : i64, scratch_operands = 0 : i64, tpu.core_type = #tpu.core_type<tc>, window_params = [{transform_indices = @transform_0, window_bounds = array<i64: 1, 2048>}, {transform_indices = @transform_1, window_bounds = array<i64: 1, 2048>}]} {
    %c0 = arith.constant 0 : index
    %c0_0 = arith.constant 0 : index
    %0 = vector.load %arg1[%c0, %c0_0] : memref<1x2048xf32, #tpu.memory_space<vmem>>, vector<1x2048xf32>
    %c0_1 = arith.constant 0 : index
    %c0_2 = arith.constant 0 : index
    %1 = vector.load %arg2[%c0_1, %c0_2] : memref<1x2048xf32, #tpu.memory_space<vmem>>, vector<1x2048xf32>
    tpu.vector_store %arg2[%c0_1, %c0_2], %0 {strides = array<i32>} : memref<1x2048xf32, #tpu.memory_space<vmem>>, vector<1x2048xf32>,
    return
  }
  func.func @transform_0(%arg0: i32) -> (i32, i32) {
    %c0_i32 = arith.constant 0 : i32
    %c0_i32_0 = arith.constant 0 : i32
    return %arg0, %c0_i32 : i32, i32
  }
  func.func @transform_1(%arg0: i32) -> (i32, i32) {
    %c0_i32 = arith.constant 0 : i32
    %c0_i32_0 = arith.constant 0 : i32
    return %arg0, %c0_i32 : i32, i32
  }
}

</mosaic_0001>

<bundles_post_ra>
// kernel: tpu_custom_call.1
= control target key start
LH: loop header
LB: loop body
LE: loop exit
PB: predicated region body
PF: predicated region fallthrough
CT: control target
= control target key end

     0   :  { %6 = vsyncpa [#allocation3], 0  ;;  %s104_s0 = inlined_call_operand.hbm [shape: f32[1,2048], index: 0, kind: input, shape index: {}]   ;;  %s105_s1 = inlined_call_operand.hbm [shape: f32[1,2048], index: 1, kind: output, shape index: {}]  }
   0x1   :  { %7 = vsyncpa [#allocation4], 0  ;;  %s86_s6 = smov [#allocation2]  }
   0x2   :  { %s14_s7 = sshll.u32 %s86_s6, 4  ;;  %s15_s7 = int_to_ptr.vmem [resolvable:$true] %s14_s7 }
   0x3   :  { %s50_s8 = scalar_lea.vmem %s15_s7, 256  ;;  %p55_p1 = scmp.lt.s32.totalorder %s15_s7, %s15_s7 }
   0x4   :  { %p51_p0 = scmp.ne.s32.totalorder %s15_s7, %s50_s8  ;;  %p56_p2 = scmp.lt.s32.totalorder %s50_s8, %s50_s8 }
   0x6   :  { %p57_p3 = por %p56_p2, %p55_p1 }
   0x8   :  { %p58_p4 = pnand %p57_p3, %p51_p0 }
   0xa   :  { %61 = shalt.err (!%p58_p4)
}
   0xb   :  { %17 = dma.hbm_to_vmem [thread:$0]  %s104_s0, 256, %s15_s7, [#allocation3]  }
   0xc   :  { %82 = dma.done.wait [#allocation3], 256  }
   0xd   :  { %83 = vsyncadd [#allocation3], 4294967040  ;;  %s87_s11 = smov [#allocation5]   ;;  %v21_v0 = vld [vmem:[#allocation2] sm:$0xff]  ;;  %v22_v1 = vld [vmem:[#allocation2 + $0x8] sm:$0xff] }
   0xe   :  { %s31_s12 = sshll.u32 %s87_s11, 4  ;;  %23 = vst [vmem:[#allocation5] sm:$0xff] %v21_v0  ;;  %24 = vst [vmem:[#allocation5 + $0x8] sm:$0xff] %v22_v1  ;;  %s32_s12 = int_to_ptr.vmem [resolvable:$true] %s31_s12 }
   0xf   :  { %s62_s13 = scalar_lea.vmem %s32_s12, 256  ;;  %p67_p6 = scmp.lt.s32.totalorder %s32_s12, %s32_s12 }
  0x10   :  { %p63_p5 = scmp.ne.s32.totalorder %s32_s12, %s62_s13  ;;  %p68_p7 = scmp.lt.s32.totalorder %s62_s13, %s62_s13 }
  0x12   :  { %p69_p8 = por %p68_p7, %p67_p6 }
  0x14   :  { %p70_p9 = pnand %p69_p8, %p63_p5 }
  0x16   :  { %73 = shalt.err (!%p70_p9)
}
  0x17   :  { %34 = dma.vmem_to_hbm [thread:$0]  %s32_s12, 256, %s105_s1, [#allocation4]  }
  0x18   :  { %84 = dma.done.wait [#allocation4], 256  }
  0x19   :  { %85 = vsyncadd [#allocation4], 4294967040 }
  0x1a   :  { %38 = vsyncpa [#allocation3], 1 }
  0x1b   :  { %39 = vsyncpa [#allocation4], 1 }

</bundles_post_ra>
